<compile_context>
chip_gen: v7x
topology: tpu7x:2x2x1
jax: 0.10.0
libtpu: 0.0.40
codegen_flags: <defaults>
</compile_context>

<pallas_src>
import math
import numpy as np

import jax
import jax.numpy as jnp
from jax.experimental import pallas as pl
from jax.experimental.pallas import tpu as pltpu


# --------------------------------------------------------------------------
# Bilinear interpolation matrices (F.interpolate, mode='bilinear',
# align_corners=False; exact when in*scale is integral -- asserted below).
# --------------------------------------------------------------------------
def _bilinear_matrix(in_size, out_size):
    scale = in_size / out_size
    A = np.zeros((out_size, in_size), dtype=np.float32)
    for i in range(out_size):
        src = max((i + 0.5) * scale - 0.5, 0.0)
        x0 = min(int(math.floor(src)), in_size - 1)
        x1 = min(x0 + 1, in_size - 1)
        lam = src - x0
        A[i, x0] += 1.0 - lam
        A[i, x1] += lam
    return A


def _spatial_pool_weights(H, W, spatial_scales):
    """Row s = flattened (H,W) weights s.t. mean(Ah_s @ frame @ Aw_s^T) == <w_s, frame>."""
    rows = []
    for s in spatial_scales:
        if s == 1.0:
            w2 = np.full((H, W), 1.0 / (H * W), dtype=np.float32)
        else:
            Ho, Wo = int(math.floor(H * s)), int(math.floor(W * s))
            assert abs(H * s - Ho) < 1e-6 and abs(W * s - Wo) < 1e-6, (
                "H*s / W*s must be integral so scale=in/out matches "
                "F.interpolate(scale_factor=s) semantics.")
            Ah = _bilinear_matrix(H, Ho)          # (Ho, H)
            Aw = _bilinear_matrix(W, Wo)          # (Wo, W)
            w2 = np.outer(Ah.sum(0), Aw.sum(0)) / float(Ho * Wo)
        rows.append(w2.reshape(-1).astype(np.float32))
    return jnp.asarray(np.stack(rows, axis=0))    # (S, H*W)


# --------------------------------------------------------------------------
# Kernel 1: streaming per-frame multi-scale spatial pool (the only kernel that
# touches the full video; x is read from HBM exactly once for all scales).
# --------------------------------------------------------------------------
def _frame_pool_kernel(x_ref, wsp_ref, fm_ref):
    # x: (bB, HW) frames-as-rows ; wsp: (S, HW) ; out block: (S, bB) lane-dense.
    fm_ref[...] = jax.lax.dot_general(
        wsp_ref[...], x_ref[...],
        dimension_numbers=(((1,), (1,)), ((), ())),     # contract over HW (A @ B^T)
        preferred_element_type=jnp.float32)


def _row_tile(B, HW, bytes_per_elem=4, target_block_bytes=4 << 20):
    # ~4 MiB per x block -> 8 MiB double-buffered: safe on v7x (64 MiB VMEM),
    # comfortably within the 32 MiB scoped limit set below on v5e/v6e.
    if B * HW * bytes_per_elem <= target_block_bytes:
        return B
    rows = max(128, (target_block_bytes // (HW * bytes_per_elem)) // 128 * 128)
    return min(B, rows)


def frame_multi_scale_pool(x2d, wsp_T):
    """(B, H*W) frames x (S, H*W) pool weights -> (S, B) per-frame spatial means."""
    B, HW = x2d.shape
    S = wsp_T.shape[0]
    bB = _row_tile(B, HW, x2d.dtype.itemsize)
    return pl.pallas_call(
        _frame_pool_kernel,
        out_shape=jax.ShapeDtypeStruct((S, B), jnp.float32),
        grid=(pl.cdiv(B, bB),),
        in_specs=[pl.BlockSpec((bB, HW), lambda i: (i, 0)),
                  pl.BlockSpec((S, HW), lambda i: (0, 0))],
        out_specs=pl.BlockSpec((S, bB), lambda i: (0, i)),
        compiler_params=pltpu.CompilerParams(
            dimension_semantics=("parallel",),          # shard frame axis across TCs (v7x)
            vmem_limit_bytes=32 * 1024 * 1024),
    )(x2d, wsp_T)


# --------------------------------------------------------------------------
# Kernel 2: all (spatial x temporal) scale pairs + running max in one call.
# Scalar prefetch: spatial column index, temporal crop start, crop length.
# --------------------------------------------------------------------------
def _msc_head_kernel(sidx_ref, start_ref, len_ref, fm_ref, w_ref, b_ref,
                     logits_ref, max_ref):
    p = pl.program_id(0)
    fm = fm_ref[0]                                            # (N, C, T)
    start = start_ref[p]
    length = len_ref[p]
    # Temporal crop as a mask (crop lengths differ per pair); fm is tiny.
    t_idx = jax.lax.broadcasted_iota(jnp.int32, fm.shape, 2)
    in_crop = (t_idx >= start) & (t_idx < start + length)
    pooled = jnp.sum(jnp.where(in_crop, fm, 0.0), axis=2) / length.astype(jnp.float32)
    logits = (jnp.dot(pooled, w_ref[...], preferred_element_type=jnp.float32)
              + b_ref[...])                                   # (N, K)
    logits_ref[0] = logits

    @pl.when(p == 0)
    def _init():
        max_ref[...] = logits

    @pl.when(p > 0)
    def _update():
        max_ref[...] = jnp.maximum(max_ref[...], logits)


def msc_head(fm4, w, b, sidx, starts, lens):
    S, N, C, T = fm4.shape
    K = w.shape[1]
    P = int(sidx.shape[0])
    grid_spec = pltpu.PrefetchScalarGridSpec(
        num_scalar_prefetch=3,
        grid=(P,),
        in_specs=[
            # data-dependent spatial-scale selection via the prefetched index
            pl.BlockSpec((1, N, C, T), lambda p, si, st, ln: (si[p], 0, 0, 0)),
            pl.BlockSpec((C, K), lambda p, si, st, ln: (0, 0)),
            pl.BlockSpec((1, K), lambda p, si, st, ln: (0, 0)),
        ],
        out_specs=(
            pl.BlockSpec((1, N, K), lambda p, si, st, ln: (p, 0, 0)),
            pl.BlockSpec((N, K), lambda p, si, st, ln: (0, 0)),   # resident running max
        ),
    )
    return pl.pallas_call(
        _msc_head_kernel,
        out_shape=(jax.ShapeDtypeStruct((P, N, K), jnp.float32),
                   jax.ShapeDtypeStruct((N, K), jnp.float32)),
        grid_spec=grid_spec,
        compiler_params=pltpu.CompilerParams(
            dimension_semantics=("arbitrary",)),
    )(sidx, starts, lens, fm4, w, b)


# --------------------------------------------------------------------------
# Forward pass
# --------------------------------------------------------------------------
def _draw_pair_specs(key, spatial_scales, temporal_scales, T):
    """Runtime crop specs (spatial column, start frame, crop length) per pair."""
    sidx, starts, lens = [], [], []
    for si, _s in enumerate(spatial_scales):
        for t in temporal_scales:
            tT = T if t == 1.0 else int(t * T)
            sidx.append(si)
            lens.append(tT)
            if t == 1.0:
                starts.append(jnp.zeros((), jnp.int32))
            else:
                key, sub = jax.random.split(key)
                starts.append(jax.random.randint(sub, (), 0, T - tT + 1,
                                                 dtype=jnp.int32))
    return (jnp.asarray(sidx, dtype=jnp.int32),
            jnp.stack(starts),
            jnp.asarray(lens, dtype=jnp.int32))


def spatio_temporal_msc_forward(x, base_params, *, spatial_scales=(1.0, 0.75),
                                temporal_scales=(1.0, 0.5), training=True,
                                val_msc=False, rng_key=None):
    w, b = base_params
    N, C, T, H, W = x.shape
    x2d = x.reshape(N * C * T, H * W)                 # frames as rows, HW on lanes

    if training or val_msc:
        wsp_T = _spatial_pool_weights(H, W, spatial_scales)
        fm = frame_multi_scale_pool(x2d, wsp_T)       # (S, N*C*T), x read once
        fm4 = fm.reshape(len(spatial_scales), N, C, T)
        sidx, starts, lens = _draw_pair_specs(rng_key, spatial_scales,
                                              temporal_scales, T)
        logits_all, max_logits = msc_head(fm4, w, b, sidx, starts, lens)
        if training:
            return [logits_all[i] for i in range(logits_all.shape[0])] + [max_logits]
        return max_logits

    # plain eval branch: base(x) directly (identity spatial scale, full T)
    wsp_T = _spatial_pool_weights(H, W, (1.0,))
    fm4 = frame_multi_scale_pool(x2d, wsp_T).reshape(1, N, C, T)
    sidx = jnp.zeros((1,), jnp.int32)
    starts = jnp.zeros((1,), jnp.int32)
    lens = jnp.full((1,), T, jnp.int32)
    logits_all, _ = msc_head(fm4, w, b, sidx, starts, lens)
    return logits_all[0]


# --------------------------------------------------------------------------
# Pure-JAX reference (explicit resize / crop / pool / linear) for validation.
# --------------------------------------------------------------------------
def _reference_forward(x, w, b, spatial_scales, sidx, starts, lens):
    N, C, T, H, W = x.shape
    resized = []
    for s in spatial_scales:
        if s == 1.0:
            resized.append(x)
        else:
            Ho, Wo = int(math.floor(H * s)), int(math.floor(W * s))
            Ah = jnp.asarray(_bilinear_matrix(H, Ho))
            Aw = jnp.asarray(_bilinear_matrix(W, Wo))
            resized.append(jnp.einsum('oh,ncthw,pw->nctop', Ah, x, Aw))
    logits_list = []
    for i in range(int(sidx.shape[0])):
        sx = resized[int(sidx[i])]
        st, ln = int(starts[i]), int(lens[i])
        stx = sx[:, :, st:st + ln]
        pooled = stx.reshape(N, C, -1).mean(axis=-1)
        logits_list.append(pooled @ w + b)
    return logits_list, jnp.max(jnp.stack(logits_list), axis=0)


# --------------------------------------------------------------------------
if __name__ == "__main__":
    key = jax.random.PRNGKey(0)
    kx, kw, kb, kt = jax.random.split(key, 4)

    N, C, T, H, W = 2, 4, 8, 16, 16                  # small NCTHW video
    K = 8                                            # number of classes
    spatial_scales = (1.0, 0.75)
    temporal_scales = (1.0, 0.5)

    x = jax.random.normal(kx, (N, C, T, H, W), dtype=jnp.float32)
    base_w = 0.1 * jax.random.normal(kw, (C, K), dtype=jnp.float32)
    base_b = 0.01 * jax.random.normal(kb, (1, K), dtype=jnp.float32)

    # training branch: list of per-scale logits + elementwise max
    train_outs = spatio_temporal_msc_forward(
        x, (base_w, base_b), spatial_scales=spatial_scales,
        temporal_scales=temporal_scales, training=True, val_msc=False, rng_key=kt)
    train_outs = jax.block_until_ready(train_outs)
    assert len(train_outs) == len(spatial_scales) * len(temporal_scales) + 1
    assert all(o.shape == (N, K) for o in train_outs)

    # eval-with-msc branch: just the max logits
    eval_out = jax.block_until_ready(spatio_temporal_msc_forward(
        x, (base_w, base_b), spatial_scales=spatial_scales,
        temporal_scales=temporal_scales, training=False, val_msc=True, rng_key=kt))
    assert eval_out.shape == (N, K)

    # plain eval branch: base(x) directly
    plain_out = jax.block_until_ready(spatio_temporal_msc_forward(
        x, (base_w, base_b), training=False, val_msc=False, rng_key=kt))
    assert plain_out.shape == (N, K)

    # validate against an explicit resize+crop+pool+linear reference
    sidx, starts, lens = _draw_pair_specs(kt, spatial_scales, temporal_scales, T)
    ref_logits, ref_max = _reference_forward(x, base_w, base_b, spatial_scales,
                                             sidx, starts, lens)
    for got, want in zip(train_outs[:-1], ref_logits):
        np.testing.assert_allclose(np.asarray(got), np.asarray(want),
                                   atol=1e-5, rtol=1e-4)
    np.testing.assert_allclose(np.asarray(train_outs[-1]), np.asarray(ref_max),
                               atol=1e-5, rtol=1e-4)
    np.testing.assert_allclose(np.asarray(eval_out), np.asarray(ref_max),
                               atol=1e-5, rtol=1e-4)
    ref_plain = x.reshape(N, C, -1).mean(axis=-1) @ base_w + base_b
    np.testing.assert_allclose(np.asarray(plain_out), np.asarray(ref_plain),
                               atol=1e-5, rtol=1e-4)

    print("KERNEL_OK")
</pallas_src>

<mosaic_0001>
module attributes {stable_mosaic.version = 11 : i64} {
  func.func @_frame_pool_kernel(%arg0: i32, %arg1: memref<64x256xf32, #tpu.memory_space<vmem>>, %arg2: memref<2x256xf32, #tpu.memory_space<vmem>>, %arg3: memref<2x64xf32, #tpu.memory_space<vmem>>) attributes {dimension_semantics = [#tpu.dimension_semantics<parallel>], iteration_bounds = array<i64: 1>, scalar_prefetch = 0 : i64, scratch_operands = 0 : i64, tpu.core_type = #tpu.core_type<tc>, window_params = [{transform_indices = @transform_0, window_bounds = array<i64: 64, 256>}, {pipeline_mode = #tpu.pipeline_mode<synchronous>, transform_indices = @transform_1, window_bounds = array<i64: 2, 256>}, {transform_indices = @transform_2, window_bounds = array<i64: 2, 64>}]} {
    %c0 = arith.constant 0 : index
    %c0_0 = arith.constant 0 : index
    %0 = vector.load %arg2[%c0, %c0_0] : memref<2x256xf32, #tpu.memory_space<vmem>>, vector<2x256xf32>
    %c0_1 = arith.constant 0 : index
    %c0_2 = arith.constant 0 : index
    %1 = vector.load %arg1[%c0_1, %c0_2] : memref<64x256xf32, #tpu.memory_space<vmem>>, vector<64x256xf32>
    %cst = arith.constant dense<0.000000e+00> : vector<2x64xf32>
    %2 = tpu.matmul %0, %1, %cst {dimension_numbers = #tpu.dot_dimension_numbers<[1], [1], [0], [0], [0, 0, 1, 0], [], []>} : vector<2x256xf32>, vector<64x256xf32>, vector<2x64xf32> -> vector<2x64xf32>
    %c0_3 = arith.constant 0 : index
    %c0_4 = arith.constant 0 : index
    %3 = vector.load %arg3[%c0_3, %c0_4] : memref<2x64xf32, #tpu.memory_space<vmem>>, vector<2x64xf32>
    tpu.vector_store %arg3[%c0_3, %c0_4], %2 {strides = array<i32>} : memref<2x64xf32, #tpu.memory_space<vmem>>, vector<2x64xf32>,
    return
  }
  func.func @transform_0(%arg0: i32) -> (i32, i32) {
    %c0_i32 = arith.constant 0 : i32
    %c0_i32_0 = arith.constant 0 : i32
    return %arg0, %c0_i32 : i32, i32
  }
  func.func @transform_1(%arg0: i32) -> (i32, i32) {
    %c0_i32 = arith.constant 0 : i32
    %c0_i32_0 = arith.constant 0 : i32
    %c0_i32_1 = arith.constant 0 : i32
    return %c0_i32, %c0_i32_0 : i32, i32
  }
  func.func @transform_2(%arg0: i32) -> (i32, i32) {
    %c0_i32 = arith.constant 0 : i32
    %c0_i32_0 = arith.constant 0 : i32
    return %c0_i32, %arg0 : i32, i32
  }
}

</mosaic_0001>

<bundles_post_ra>
// kernel: tpu_custom_call.1
= control target key start
LH: loop header
LB: loop body
LE: loop exit
PB: predicated region body
PF: predicated region fallthrough
CT: control target
= control target key end

     0   :  { %7 = vsyncpa [#allocation3], 0  ;;  %s304_s0 = inlined_call_operand.hbm [shape: f32[64,256], index: 0, kind: input, shape index: {}]   ;;  %s305_s1 = inlined_call_operand.hbm [shape: f32[2,256], index: 1, kind: input, shape index: {}]   ;;  %s306_s2 = inlined_call_operand.hbm [shape: f32[2,64], index: 2, kind: output, shape index: {}]  }
   0x1   :  { %8 = vsyncpa [#allocation6], 0 }
   0x2   :  { %9 = vsyncpa [#allocation4], 0  ;;  %s248_s9 = smov [#allocation2]   ;;  %s176_s13 = scalar_lea.hbm %s304_s0, 2048 }
   0x3   :  { %s15_s10 = sshll.u32 %s248_s9, 4  ;;  %p177_p0 = scmp.ne.s32.totalorder %s304_s0, %s176_s13  ;;  %s16_s10 = int_to_ptr.vmem [resolvable:$true] %s15_s10 }
   0x4   :  { %p180_p1 = scmp.lt.u32.totalorder %s176_s13, %s304_s0 }
   0x6   :  { %p182_p2 = pnand %p180_p1, %p177_p0 }
   0x8   :  { %185 = shalt.err (!%p182_p2)
}
   0x9   :  { %s186_s18 = scalar_lea.vmem %s16_s10, 2048  ;;  %p191_p4 = scmp.lt.s32.totalorder %s16_s10, %s16_s10 }
   0xa   :  { %p187_p3 = scmp.ne.s32.totalorder %s16_s10, %s186_s18  ;;  %p192_p5 = scmp.lt.s32.totalorder %s186_s18, %s186_s18 }
   0xc   :  { %p193_p6 = por %p192_p5, %p191_p4 }
   0xe   :  { %p194_p7 = pnand %p193_p6, %p187_p3 }
  0x10   :  { %197 = shalt.err (!%p194_p7)
}
  0x11   :  { %s249_s19 = smov 256   ;;  %s250_s20 = smov 16  }
  0x12   :  { %21 = dma.hbm_to_vmem [thread:$0]  %s304_s0, 2048, %s16_s10, [#allocation3], %s249_s19, %s249_s19, %s250_s20  }
  0x13   :  { %s251_s23 = smov [#allocation5]   ;;  %s198_s27 = scalar_lea.hbm %s305_s1, 64 }
  0x14   :  { %s28_s24 = sshll.u32 %s251_s23, 4  ;;  %p199_p8 = scmp.ne.s32.totalorder %s305_s1, %s198_s27  ;;  %s29_s24 = int_to_ptr.vmem [resolvable:$true] %s28_s24 }
  0x15   :  { %p202_p9 = scmp.lt.u32.totalorder %s198_s27, %s305_s1 }
  0x17   :  { %p204_p10 = pnand %p202_p9, %p199_p8 }
  0x19   :  { %207 = shalt.err (!%p204_p10)
}
  0x1a   :  { %s208_s4 = scalar_lea.vmem %s29_s24, 64  ;;  %p213_p12 = scmp.lt.s32.totalorder %s29_s24, %s29_s24 }
  0x1b   :  { %p209_p11 = scmp.ne.s32.totalorder %s29_s24, %s208_s4  ;;  %p214_p13 = scmp.lt.s32.totalorder %s208_s4, %s208_s4 }
  0x1d   :  { %p215_p0 = por %p214_p13, %p213_p12 }
  0x1f   :  { %p216_p1 = pnand %p215_p0, %p209_p11 }
  0x21   :  { %219 = shalt.err (!%p216_p1)
}
  0x22   :  { %31 = dma.hbm_to_vmem [thread:$0]  %s305_s1, 64, %s29_s24, [#allocation6]  }
  0x23   :  { %242 = dma.done.wait [#allocation3], 2048  }
  0x24   :  { %243 = vsyncadd [#allocation3], 4294965248 }
  0x25   :  { %244 = dma.done.wait [#allocation6], 64  }
  0x26   :  { %245 = vsyncadd [#allocation6], 4294967232  ;;  %v40_v0 = vld [vmem:[#allocation2 + $0x8] sm:$0xff]  ;;  %v42_v1 = vld [vmem:[#allocation2 + $0x18] sm:$0xff]  ;;  %s252_s1 = smov [#allocation7]   ;;  %vm136_vm0 = vcmask 517120  }
  0x27   :  { %v39_v2 = vld [vmem:[#allocation2] sm:$0xff]  ;;  %v155_v3 = vpack.c.bf16 %v42_v1, %v40_v0  ;;  %v41_v4 = vld [vmem:[#allocation2 + $0x10] sm:$0xff]  ;;  %v44_v5 = vld [vmem:[#allocation2 + $0x28] sm:$0xff]  ;;  %s144_s6 = sshll.u32 %s252_s1, 4  ;;  %s145_s6 = int_to_ptr.vmem [resolvable:$true] %s144_s6 }
  0x28   :  { %v46_v6 = vld [vmem:[#allocation2 + $0x38] sm:$0xff]  ;;  %v157_v7 = vpack.c.bf16 %v41_v4, %v39_v2  ;;  %v43_v9 = vld [vmem:[#allocation2 + $0x20] sm:$0xff]  ;;  %v45_v10 = vld [vmem:[#allocation2 + $0x30] sm:$0xff]  ;;  %s220_s7 = scalar_lea.vmem %s145_s6, 32  ;;  %p225_p3 = scmp.lt.s32.totalorder %s145_s6, %s145_s6 }
  0x29   :  { %v159_v8 = vpack.c.bf16 %v46_v6, %v44_v5  ;;  %156 = vmatprep.subr.bf16.mxu0 %v155_v3  ;;  %v154_v11 = vld.sshfl [vmem:[#allocation5] sm:$0x33 pattern:$0x76325410]  ;;  %v48_v12 = vld [vmem:[#allocation2 + $0x48] sm:$0xff]  ;;  %v50_v13 = vld [vmem:[#allocation2 + $0x58] sm:$0xff]  ;;  %v161_v15 = vpack.c.bf16 %v45_v10, %v43_v9  ;;  %p221_p2 = scmp.ne.s32.totalorder %s145_s6, %s220_s7  ;;  %p226_p4 = scmp.lt.s32.totalorder %s220_s7, %s220_s7 }
  0x2a   :  { %158 = vmatpush1.bf16.xpose.msra.mxu0 %v157_v7  ;;  %v63_v14 = vcombine.high %v154_v11, %v154_v11  ;;  %v163_v16 = vpack.c.bf16 %v50_v13, %v48_v12  ;;  %v47_v17 = vld [vmem:[#allocation2 + $0x40] sm:$0xff]  ;;  %v49_v18 = vld [vmem:[#allocation2 + $0x50] sm:$0xff]  ;;  %v52_v19 = vld [vmem:[#allocation2 + $0x68] sm:$0xff] }
  0x2b   :  { %160 = vmatprep.subr.bf16.mxu0 %v159_v8  ;;  %v54_v20 = vld [vmem:[#allocation2 + $0x78] sm:$0xff]  ;;  %v165_v21 = vpack.c.bf16 %v49_v18, %v47_v17  ;;  %v51_v23 = vld [vmem:[#allocation2 + $0x60] sm:$0xff]  ;;  %v53_v24 = vld [vmem:[#allocation2 + $0x70] sm:$0xff]  ;;  %p227_p5 = por %p226_p4, %p225_p3 }
  0x2c   :  { %130 = vmatprep.mubr.f32.mxu0 %v63_v14  ;;  %v167_v22 = vpack.c.bf16 %v54_v20, %v52_v19  ;;  %v169_v25 = vpack.c.bf16 %v53_v24, %v51_v23 }
  0x2d   :  { %p228_p6 = pnand %p227_p5, %p221_p2 }
  0x32   :  { %162 = vmatpush1.bf16.xpose.msra.mxu0 %v161_v15 }
  0x33   :  { %164 = vmatprep.subr.bf16.mxu0 %v163_v16 }
  0x3a   :  { %166 = vmatpush1.bf16.xpose.msra.mxu0 %v165_v21 }
  0x3b   :  { %168 = vmatprep.subr.bf16.mxu0 %v167_v22 }
  0x42   :  { %170 = vmatpush1.bf16.xpose.msra.mxu0 %v169_v25 }
  0x49   :  { %131 = vmatmul.mubr.f32.vlgmr.msra.gmra.mrb[0].mxu0 %v154_v11 }
 0x11c   :  { %v132_v26 = vpop.f32.mrb[0].mxu0 }
 0x11d   :  { %v134_v27 = vpop.f32.mrb[1].mxu0  ;;  %137 = vst.msk [vmem:[#allocation7] sm:$0x3] %vm136_vm0, %v132_v26 }
 0x11e   :  { %231 = shalt.err (!%p228_p6)
}
 0x11f   :  { %s232_s10 = scalar_lea.hbm %s306_s2, 32 }
 0x120   :  { %p233_p7 = scmp.ne.s32.totalorder %s306_s2, %s232_s10  ;;  %p236_p8 = scmp.lt.u32.totalorder %s232_s10, %s306_s2 }
 0x122   :  { %p238_p9 = pnand %p236_p8, %p233_p7 }
 0x124   :  { %241 = shalt.err (!%p238_p9)
}
 0x125   :  { %147 = dma.vmem_to_hbm [thread:$0]  %s145_s6, 32, %s306_s2, [#allocation4]  }
 0x126   :  { %246 = dma.done.wait [#allocation4], 32  }
 0x127   :  { %247 = vsyncadd [#allocation4], 4294967264 }
 0x128   :  { %151 = vsyncpa [#allocation3], 1 }
 0x129   :  { %152 = vsyncpa [#allocation6], 1 }
 0x12a   :  { %153 = vsyncpa [#allocation4], 1 }

</bundles_post_ra>
